<compile_context>
chip_gen: v7x
topology: tpu7x:2x2x1
jax: 0.10.0
libtpu: 0.0.40
codegen_flags: <defaults>
</compile_context>

<pallas_src>
import jax
import jax.numpy as jnp
from jax.experimental import pallas as pl
from jax.experimental.pallas import tpu as pltpu


def _vmem_capacity_bytes() -> int:
    try:
        return int(pltpu.get_tpu_info().vmem_capacity_bytes)
    except Exception:
        return 64 * 1024 * 1024  # conservative (v7x-sized) fallback


def _round_up(v, m):
    return ((int(v) + m - 1) // m) * m


def _make_kernel(depth: int, compute_dtype, lane_dense_out: bool):
    """Kernel body for a fixed architecture (depth = # ReLU hidden layers)."""

    def kernel(x_ref, w1_ref, b1_ref, *refs):
        out_ref = refs[-1]
        it = iter(refs[:-1])

        # Folded first layer: h = relu(x @ W_first + b0).
        # bf16 operands, f32 MXU accumulation; bias/ReLU in f32 on the VPU.
        h = jnp.dot(x_ref[...], w1_ref[...],
                    preferred_element_type=jnp.float32) + b1_ref[...]
        h = jnp.maximum(h, 0.0)

        for _ in range(depth - 1):
            w = next(it)[...]                       # (width, width) compute dtype
            b = next(it)[...]                       # (1, width)     f32
            h = jnp.dot(h.astype(compute_dtype), w,
                        preferred_element_type=jnp.float32) + b
            h = jnp.maximum(h, 0.0)

        # Final Linear(width, 1): VPU multiply + lane reduction (no 1-column
        # MXU matmul).
        w_last = next(it)[...]                      # (1, width) f32
        b_last = next(it)[...]                      # (1, 1)     f32
        pred = jnp.sum(h * w_last, axis=-1, keepdims=True) + b_last   # (bn, 1)
        if lane_dense_out:
            # Relayout to a lane-dense row so stores are unmasked vst's.
            out_ref[...] = pred.reshape(1, -1)      # (1, bn)
        else:
            out_ref[...] = pred                     # (bn, 1) masked fallback

    return kernel


def fast_nn_forward(x, dp_mat, vs_w, relu_params, rs_mat=None, *,
                    block_n=None, compute_dtype=jnp.bfloat16):
    """Pallas implementation of FactorAugmentedSparseThroughputNN.forward.

    Args:
      x:           (N, p) float32
      dp_mat:      (p, r_bar)  -- forward uses x @ dp_mat (matches torch setup)
      vs_w:        (sparsity, p) torch Linear weight layout
      relu_params: list of (w (out, in), b (out,)) torch layouts, length depth+1
      rs_mat:      optional (r_bar, p) -- forward uses x1 @ rs_mat
      block_n:     batch tile size (auto-derived from VMEM capacity if None)
      compute_dtype: dtype for streamed x and matmul weights (bf16 default)
    """
    n, p = x.shape
    r_bar = dp_mat.shape[1]
    width = relu_params[0][0].shape[0]
    depth = len(relu_params) - 1
    assert depth >= 1, "relu_params needs >=1 hidden layer plus the final Linear"

    cd = jnp.dtype(compute_dtype)
    itemsize = cd.itemsize
    hp = jax.lax.Precision.HIGHEST  # exact f32 host folding

    # ---- Host-side exact folding of the front-end into layer 1 (f32) ----
    dp = jnp.asarray(dp_mat, jnp.float32)                      # (p, r_bar)
    vs = jnp.asarray(vs_w, jnp.float32).T                      # (p, sparsity)
    if rs_mat is not None:
        rs = jnp.asarray(rs_mat, jnp.float32)                  # (r_bar, p)
        vs_eff = vs - jnp.dot(dp, jnp.dot(rs, vs, precision=hp), precision=hp)
    else:
        vs_eff = vs
    w0, b0 = relu_params[0]
    w0t = jnp.asarray(w0, jnp.float32).T                       # (r_bar+sp, width)
    w_first = (jnp.dot(dp, w0t[:r_bar], precision=hp)
               + jnp.dot(vs_eff, w0t[r_bar:], precision=hp))   # (p, width)

    # ---- Generation-aware batch tile size ----
    vmem_cap = _vmem_capacity_bytes()               # 64 MiB/TC v7x, 128 MiB v5e/v6e
    vmem_budget = int(vmem_cap * 0.5)
    # per-row bytes: double-buffered x tile + f32 h + compute-dtype h copy + slack
    per_row = 2 * p * itemsize + 4 * width + itemsize * width + 32
    if block_n is None:
        block_n = vmem_budget // max(per_row, 1)
    block_n = min(int(block_n), 8192, max(_round_up(n, 128), 128))
    block_n = max(128, _round_up(block_n, 128))

    n_pad = _round_up(n, block_n)
    n_grid = n_pad // block_n
    x_in = x if n_pad == n else jnp.pad(x, ((0, n_pad - n), (0, 0)))

    inputs = [x_in.astype(cd),
              w_first.astype(cd),
              jnp.asarray(b0, jnp.float32).reshape(1, width)]
    in_specs = [
        pl.BlockSpec((block_n, p), lambda i: (i, 0)),
        pl.BlockSpec((p, width), lambda i: (0, 0)),
        pl.BlockSpec((1, width), lambda i: (0, 0)),
    ]
    for w, b in relu_params[1:-1]:
        inputs += [jnp.asarray(w, jnp.float32).T.astype(cd),
                   jnp.asarray(b, jnp.float32).reshape(1, width)]
        in_specs += [pl.BlockSpec((width, width), lambda i: (0, 0)),
                     pl.BlockSpec((1, width), lambda i: (0, 0))]
    w_last, b_last = relu_params[-1]
    inputs += [jnp.asarray(w_last, jnp.float32).reshape(1, width),
               jnp.asarray(b_last, jnp.float32).reshape(1, 1)]
    in_specs += [pl.BlockSpec((1, width), lambda i: (0, 0)),
                 pl.BlockSpec((1, 1), lambda i: (0, 0))]

    # Advisory cost estimate so XLA schedules around the custom call sensibly.
    weight_bytes = sum(int(a.size) * a.dtype.itemsize for a in inputs[1:])
    flops = (2 * n_pad * p * width
             + 2 * n_pad * width * width * max(depth - 1, 0)
             + 2 * n_pad * width)
    bytes_accessed = n_pad * p * itemsize + weight_bytes + n_pad * 4
    cost = pl.CostEstimate(flops=int(flops), transcendentals=0,
                           bytes_accessed=int(bytes_accessed))

    # TODO(synk): on v7x, verify the batch axis actually shards across both
    # TensorCores (try pltpu.CORE_PARALLEL / pl.core_map if xprof shows a
    # single-core run); plain "parallel" is kept here since it is safe on all
    # generations.  fp8 streaming of x is a further v7x-only option if xprof
    # still shows an HBM-bound x stream.
    params = pltpu.CompilerParams(
        dimension_semantics=("parallel",),
        vmem_limit_bytes=int(vmem_cap * 0.75))

    def build(lane_dense):
        if lane_dense:
            out_shape = jax.ShapeDtypeStruct((n_grid, block_n), jnp.float32)
            out_spec = pl.BlockSpec((1, block_n), lambda i: (i, 0))
        else:
            out_shape = jax.ShapeDtypeStruct((n_pad, 1), jnp.float32)
            out_spec = pl.BlockSpec((block_n, 1), lambda i: (i, 0))
        return pl.pallas_call(
            _make_kernel(depth, cd, lane_dense),
            out_shape=out_shape,
            grid=(n_grid,),
            in_specs=in_specs,
            out_specs=out_spec,
            compiler_params=params,
            cost_estimate=cost)

    try:
        out = jax.block_until_ready(build(True)(*inputs))
        out = out.reshape(n_pad, 1)
    except Exception:
        # TODO(synk): lane-dense stores need a (bn,1)->(1,bn) in-kernel
        # relayout; fall back to masked-column stores if Mosaic rejects it.
        out = build(False)(*inputs)
    return out[:n]


def _reference_forward(x, dp_mat, vs_w, relu_params, rs_mat=None):
    """Pure-JAX reference matching the PyTorch module semantics."""
    x1 = x @ dp_mat
    xr = x - x1 @ rs_mat if rs_mat is not None else x
    x2 = xr @ vs_w.T
    h = jnp.concatenate([x1, x2], axis=-1)
    for i, (w, b) in enumerate(relu_params):
        h = h @ w.T + b
        if i < len(relu_params) - 1:
            h = jnp.maximum(h, 0.0)
    return h


def _linear_init(key, out_f, in_f):
    """Deterministic torch-style Linear init: U(-1/sqrt(in), 1/sqrt(in))."""
    bound = 1.0 / (in_f ** 0.5)
    kw, kb = jax.random.split(key)
    w = jax.random.uniform(kw, (out_f, in_f), jnp.float32, -bound, bound)
    b = jax.random.uniform(kb, (out_f,), jnp.float32, -bound, bound)
    return w, b


if __name__ == "__main__":
    # Small shapes consistent with the module: batch N, ambient dim p,
    # factor dim r_bar, sparsity, hidden width, depth.
    N, p, r_bar, sparsity, width, depth = 200, 64, 4, 8, 32, 3

    key = jax.random.PRNGKey(0)
    keys = jax.random.split(key, 5 + depth)

    x = jax.random.normal(keys[0], (N, p), jnp.float32)
    dp_mat = jax.random.normal(keys[1], (p, r_bar), jnp.float32) / (p ** 0.5)
    rs_mat = jax.random.normal(keys[2], (r_bar, p), jnp.float32) / (r_bar ** 0.5)
    vs_w, _ = _linear_init(keys[3], sparsity, p)

    relu_params = []
    in_f = r_bar + sparsity
    for i in range(depth):
        relu_params.append(_linear_init(keys[4 + i], width, in_f))
        in_f = width
    relu_params.append(_linear_init(keys[4 + depth], 1, width))

    ref = _reference_forward(x, dp_mat, vs_w, relu_params, rs_mat=rs_mat)

    # f32 path with a forced small tile: validates the host-side folding,
    # bf16/f32 plumbing, lane-dense output and batch grid + padding.
    out_f32 = jax.block_until_ready(
        fast_nn_forward(x, dp_mat, vs_w, relu_params, rs_mat=rs_mat,
                        block_n=128, compute_dtype=jnp.float32))
    assert out_f32.shape == (N, 1)
    assert bool(jnp.allclose(out_f32, ref, rtol=1e-4, atol=1e-4)), (
        f"f32 mismatch: max abs diff = {float(jnp.max(jnp.abs(out_f32 - ref)))}")

    # bf16 streaming path with auto tile size (production default).
    out_bf16 = jax.block_until_ready(
        fast_nn_forward(x, dp_mat, vs_w, relu_params, rs_mat=rs_mat))
    assert out_bf16.shape == (N, 1)
    assert bool(jnp.allclose(out_bf16, ref, rtol=1e-1, atol=1e-1)), (
        f"bf16 mismatch: max abs diff = {float(jnp.max(jnp.abs(out_bf16 - ref)))}")

    # rs_mat=None branch (x2 = variable_selection(x)).
    ref_nr = _reference_forward(x, dp_mat, vs_w, relu_params, rs_mat=None)
    out_nr = jax.block_until_ready(
        fast_nn_forward(x, dp_mat, vs_w, relu_params, rs_mat=None,
                        block_n=128, compute_dtype=jnp.float32))
    assert bool(jnp.allclose(out_nr, ref_nr, rtol=1e-4, atol=1e-4)), (
        f"no-rs mismatch: max abs diff = {float(jnp.max(jnp.abs(out_nr - ref_nr)))}")

    print("KERNEL_OK")
</pallas_src>

<mosaic_0001>
module attributes {stable_mosaic.version = 11 : i64} {
  func.func @kernel(%arg0: i32, %arg1: memref<128x64xf32, #tpu.memory_space<vmem>>, %arg2: memref<64x32xf32, #tpu.memory_space<vmem>>, %arg3: memref<1x32xf32, #tpu.memory_space<vmem>>, %arg4: memref<32x32xf32, #tpu.memory_space<vmem>>, %arg5: memref<1x32xf32, #tpu.memory_space<vmem>>, %arg6: memref<32x32xf32, #tpu.memory_space<vmem>>, %arg7: memref<1x32xf32, #tpu.memory_space<vmem>>, %arg8: memref<1x32xf32, #tpu.memory_space<vmem>>, %arg9: memref<1x1xf32, #tpu.memory_space<vmem>>, %arg10: memref<128x1xf32, #tpu.memory_space<vmem>>) attributes {dimension_semantics = [#tpu.dimension_semantics<parallel>], iteration_bounds = array<i64: 2>, scalar_prefetch = 0 : i64, scratch_operands = 0 : i64, tpu.core_type = #tpu.core_type<tc>, window_params = [{transform_indices = @transform_0, window_bounds = array<i64: 128, 64>}, {pipeline_mode = #tpu.pipeline_mode<synchronous>, transform_indices = @transform_1, window_bounds = array<i64: 64, 32>}, {pipeline_mode = #tpu.pipeline_mode<synchronous>, transform_indices = @transform_2, window_bounds = array<i64: 1, 32>}, {pipeline_mode = #tpu.pipeline_mode<synchronous>, transform_indices = @transform_3, window_bounds = array<i64: 32, 32>}, {pipeline_mode = #tpu.pipeline_mode<synchronous>, transform_indices = @transform_4, window_bounds = array<i64: 1, 32>}, {pipeline_mode = #tpu.pipeline_mode<synchronous>, transform_indices = @transform_5, window_bounds = array<i64: 32, 32>}, {pipeline_mode = #tpu.pipeline_mode<synchronous>, transform_indices = @transform_6, window_bounds = array<i64: 1, 32>}, {pipeline_mode = #tpu.pipeline_mode<synchronous>, transform_indices = @transform_7, window_bounds = array<i64: 1, 32>}, {pipeline_mode = #tpu.pipeline_mode<synchronous>, transform_indices = @transform_8, window_bounds = array<i64: 1, 1>}, {transform_indices = @transform_9, window_bounds = array<i64: 128, 1>}]} {
    %c0 = arith.constant 0 : index
    %c0_0 = arith.constant 0 : index
    %0 = vector.load %arg1[%c0, %c0_0] : memref<128x64xf32, #tpu.memory_space<vmem>>, vector<128x64xf32>
    %c0_1 = arith.constant 0 : index
    %c0_2 = arith.constant 0 : index
    %1 = vector.load %arg2[%c0_1, %c0_2] : memref<64x32xf32, #tpu.memory_space<vmem>>, vector<64x32xf32>
    %cst = arith.constant dense<0.000000e+00> : vector<128x32xf32>
    %2 = tpu.matmul %0, %1, %cst {dimension_numbers = #tpu.dot_dimension_numbers<[1], [0], [0], [1], [0, 0, 1, 1], [], []>} : vector<128x64xf32>, vector<64x32xf32>, vector<128x32xf32> -> vector<128x32xf32>
    %c0_3 = arith.constant 0 : index
    %c0_4 = arith.constant 0 : index
    %3 = vector.load %arg3[%c0_3, %c0_4] : memref<1x32xf32, #tpu.memory_space<vmem>>, vector<1x32xf32>
    %4 = vector.broadcast %3 : vector<1x32xf32> to vector<128x32xf32>
    %5 = arith.addf %2, %4 : vector<128x32xf32>
    %cst_5 = arith.constant 0.000000e+00 : f32
    %6 = vector.broadcast %cst_5 : f32 to vector<128x32xf32>
    %7 = arith.maximumf %5, %6 : vector<128x32xf32>
    %c0_6 = arith.constant 0 : index
    %c0_7 = arith.constant 0 : index
    %8 = vector.load %arg4[%c0_6, %c0_7] : memref<32x32xf32, #tpu.memory_space<vmem>>, vector<32x32xf32>
    %c0_8 = arith.constant 0 : index
    %c0_9 = arith.constant 0 : index
    %9 = vector.load %arg5[%c0_8, %c0_9] : memref<1x32xf32, #tpu.memory_space<vmem>>, vector<1x32xf32>
    %cst_10 = arith.constant dense<0.000000e+00> : vector<128x32xf32>
    %10 = tpu.matmul %7, %8, %cst_10 {dimension_numbers = #tpu.dot_dimension_numbers<[1], [0], [0], [1], [0, 0, 1, 1], [], []>} : vector<128x32xf32>, vector<32x32xf32>, vector<128x32xf32> -> vector<128x32xf32>
    %11 = vector.broadcast %9 : vector<1x32xf32> to vector<128x32xf32>
    %12 = arith.addf %10, %11 : vector<128x32xf32>
    %cst_11 = arith.constant 0.000000e+00 : f32
    %13 = vector.broadcast %cst_11 : f32 to vector<128x32xf32>
    %14 = arith.maximumf %12, %13 : vector<128x32xf32>
    %c0_12 = arith.constant 0 : index
    %c0_13 = arith.constant 0 : index
    %15 = vector.load %arg6[%c0_12, %c0_13] : memref<32x32xf32, #tpu.memory_space<vmem>>, vector<32x32xf32>
    %c0_14 = arith.constant 0 : index
    %c0_15 = arith.constant 0 : index
    %16 = vector.load %arg7[%c0_14, %c0_15] : memref<1x32xf32, #tpu.memory_space<vmem>>, vector<1x32xf32>
    %cst_16 = arith.constant dense<0.000000e+00> : vector<128x32xf32>
    %17 = tpu.matmul %14, %15, %cst_16 {dimension_numbers = #tpu.dot_dimension_numbers<[1], [0], [0], [1], [0, 0, 1, 1], [], []>} : vector<128x32xf32>, vector<32x32xf32>, vector<128x32xf32> -> vector<128x32xf32>
    %18 = vector.broadcast %16 : vector<1x32xf32> to vector<128x32xf32>
    %19 = arith.addf %17, %18 : vector<128x32xf32>
    %cst_17 = arith.constant 0.000000e+00 : f32
    %20 = vector.broadcast %cst_17 : f32 to vector<128x32xf32>
    %21 = arith.maximumf %19, %20 : vector<128x32xf32>
    %c0_18 = arith.constant 0 : index
    %c0_19 = arith.constant 0 : index
    %22 = vector.load %arg8[%c0_18, %c0_19] : memref<1x32xf32, #tpu.memory_space<vmem>>, vector<1x32xf32>
    %c0_20 = arith.constant 0 : index
    %c0_21 = arith.constant 0 : index
    %23 = vector.load %arg9[%c0_20, %c0_21] : memref<1x1xf32, #tpu.memory_space<vmem>>, vector<1x1xf32>
    %24 = vector.broadcast %22 : vector<1x32xf32> to vector<128x32xf32>
    %25 = arith.mulf %21, %24 : vector<128x32xf32>
    %cst_22 = arith.constant dense<0.000000e+00> : vector<128xf32>
    %26 = vector.multi_reduction <add>, %25, %cst_22 [1] : vector<128x32xf32> to vector<128xf32>
    %27 = vector.shape_cast %26 : vector<128xf32> to vector<128x1xf32>
    %28 = vector.broadcast %23 : vector<1x1xf32> to vector<128x1xf32>
    %29 = arith.addf %27, %28 : vector<128x1xf32>
    %c0_23 = arith.constant 0 : index
    %c0_24 = arith.constant 0 : index
    %30 = vector.load %arg10[%c0_23, %c0_24] : memref<128x1xf32, #tpu.memory_space<vmem>>, vector<128x1xf32>
    tpu.vector_store %arg10[%c0_23, %c0_24], %29 {strides = array<i32>} : memref<128x1xf32, #tpu.memory_space<vmem>>, vector<128x1xf32>,
    return
  }
  func.func @transform_0(%arg0: i32) -> (i32, i32) {
    %c0_i32 = arith.constant 0 : i32
    %c0_i32_0 = arith.constant 0 : i32
    return %arg0, %c0_i32 : i32, i32
  }
  func.func @transform_1(%arg0: i32) -> (i32, i32) {
    %c0_i32 = arith.constant 0 : i32
    %c0_i32_0 = arith.constant 0 : i32
    %c0_i32_1 = arith.constant 0 : i32
    return %c0_i32, %c0_i32_0 : i32, i32
  }
  func.func @transform_2(%arg0: i32) -> (i32, i32) {
    %c0_i32 = arith.constant 0 : i32
    %c0_i32_0 = arith.constant 0 : i32
    %c0_i32_1 = arith.constant 0 : i32
    return %c0_i32, %c0_i32_0 : i32, i32
  }
  func.func @transform_3(%arg0: i32) -> (i32, i32) {
    %c0_i32 = arith.constant 0 : i32
    %c0_i32_0 = arith.constant 0 : i32
    %c0_i32_1 = arith.constant 0 : i32
    return %c0_i32, %c0_i32_0 : i32, i32
  }
  func.func @transform_4(%arg0: i32) -> (i32, i32) {
    %c0_i32 = arith.constant 0 : i32
    %c0_i32_0 = arith.constant 0 : i32
    %c0_i32_1 = arith.constant 0 : i32
    return %c0_i32, %c0_i32_0 : i32, i32
  }
  func.func @transform_5(%arg0: i32) -> (i32, i32) {
    %c0_i32 = arith.constant 0 : i32
    %c0_i32_0 = arith.constant 0 : i32
    %c0_i32_1 = arith.constant 0 : i32
    return %c0_i32, %c0_i32_0 : i32, i32
  }
  func.func @transform_6(%arg0: i32) -> (i32, i32) {
    %c0_i32 = arith.constant 0 : i32
    %c0_i32_0 = arith.constant 0 : i32
    %c0_i32_1 = arith.constant 0 : i32
    return %c0_i32, %c0_i32_0 : i32, i32
  }
  func.func @transform_7(%arg0: i32) -> (i32, i32) {
    %c0_i32 = arith.constant 0 : i32
    %c0_i32_0 = arith.constant 0 : i32
    %c0_i32_1 = arith.constant 0 : i32
    return %c0_i32, %c0_i32_0 : i32, i32
  }
  func.func @transform_8(%arg0: i32) -> (i32, i32) {
    %c0_i32 = arith.constant 0 : i32
    %c0_i32_0 = arith.constant 0 : i32
    %c0_i32_1 = arith.constant 0 : i32
    return %c0_i32, %c0_i32_0 : i32, i32
  }
  func.func @transform_9(%arg0: i32) -> (i32, i32) {
    %c0_i32 = arith.constant 0 : i32
    %c0_i32_0 = arith.constant 0 : i32
    return %arg0, %c0_i32 : i32, i32
  }
}

</mosaic_0001>

<bundles_post_ra>
// kernel: tpu_custom_call.1
= control target key start
LH: loop header
LB: loop body
LE: loop exit
PB: predicated region body
PF: predicated region fallthrough
CT: control target
= control target key end

     0   :  { %s1524_s11 = smov 0   ;;  %s1778_s0 = inlined_call_operand.vmem [shape: f32[256,64], index: 0, kind: input, shape index: {}]   ;;  %s1779_s1 = inlined_call_operand.vmem [shape: f32[64,32], index: 1, kind: input, shape index: {}]   ;;  %s1780_s2 = inlined_call_operand.vmem [shape: f32[1,32], index: 2, kind: input, shape index: {}]   ;;  %s1781_s3 = inlined_call_operand.vmem [shape: f32[32,32], index: 3, kind: input, shape index: {}]   ;;  %s1782_s4 = inlined_call_operand.vmem [shape: f32[1,32], index: 4, kind: input, shape index: {}]   ;;  %s1783_s5 = inlined_call_operand.vmem [shape: f32[32,32], index: 5, kind: input, shape index: {}]   ;;  %s1784_s6 = inlined_call_operand.vmem [shape: f32[1,32], index: 6, kind: input, shape index: {}]   ;;  %s1785_s7 = inlined_call_operand.vmem [shape: f32[1,32], index: 7, kind: input, shape index: {}]   ;;  %s1786_s8 = inlined_call_operand.<no memory space> [shape: f32[1,1], index: 8, kind: input, shape index: {}]   ;;  %s1787_s9 = inlined_call_operand.vmem [shape: f32[256,1], index: 9, kind: output, shape index: {}]  }
   0x1   :  { %v14_v0 = vstv %s1786_s8 }
   0x2   :  { %15 = vst [vmem:[#allocation2] sm:$0x1] %v14_v0 }
   0x3 LB: > { %s1187_s12 = sadd.s32 4294967295, %s1469_s11   ;;  %p1191_p0 = scmp.ge.s32.totalorder %s1469_s11, 1  ;;  %s1469_s11 = sphi %s1524_s11, %s21_s11  }
   0x4   : > { %p290_p1 = scmp.lt.s32.totalorder %s1469_s11, 3 }
   0x6   : > { %p291_p2 = pnand %p1191_p0, %p290_p1 }
   0x7   : > { %v354_v1 = vld [vmem:[%s1779_s1] sm:$0xff] (!%p291_p2)  ;;  %v355_v2 = vld [vmem:[%s1779_s1 + $0x8] sm:$0xff] (!%p291_p2)  ;;  %v356_v3 = vld [vmem:[%s1779_s1 + $0x10] sm:$0xff] (!%p291_p2)  ;;  %s1192_s18 = sshll.u32 (!%p291_p2), %s1187_s12, 4  ;;  %vm369_vm0 = vcmask (!%p291_p2), 523264   ;;  %vm590_vm1 = vcmask (!%p291_p2), 261120  }
   0x8   : > { %294 = sbr.rel (%p291_p2) target bundleno = 858 (0x35a), region = 56  ;;  %v1419_v4 = vpack.c.bf16 (!%p291_p2), %v355_v2, %v354_v1  ;;  %v357_v5 = vld [vmem:[%s1779_s1 + $0x18] sm:$0xff] (!%p291_p2)  ;;  %p327_p3 = scmp.lt.s32.totalorder (!%p291_p2), %s1192_s18, 31  ;;  %v358_v7 = vld [vmem:[%s1779_s1 + $0x20] sm:$0xff] (!%p291_p2)  ;;  %v359_v8 = vld [vmem:[%s1779_s1 + $0x28] sm:$0xff] (!%p291_p2)  ;;  %vm1114_vm2 = vcmask (!%p291_p2), 7168  }
   0x9   : > { %v1423_v6 = vpack.c.bf16 (!%p291_p2), %v357_v5, %v356_v3  ;;  %v579_v9 = vld [vmem:[%s1781_s3] sm:$0xff] (!%p291_p2)  ;;  %v580_v10 = vld [vmem:[%s1781_s3 + $0x8] sm:$0xff] (!%p291_p2)  ;;  %v581_v12 = vld [vmem:[%s1781_s3 + $0x10] sm:$0xff] (!%p291_p2)  ;;  %v1427_v14 = vpack.c.bf16 (!%p291_p2), %v359_v8, %v358_v7 }
   0xa   : > { %1420 = vmatprep.subr.bf16.mxu0 (!%p291_p2), %v1419_v4  ;;  %v1435_v11 = vpack.c.bf16 (!%p291_p2), %v580_v10, %v579_v9  ;;  %v582_v13 = vld [vmem:[%s1781_s3 + $0x18] sm:$0xff] (!%p291_p2)  ;;  %v360_v15 = vld [vmem:[%s1779_s1 + $0x30] sm:$0xff] (!%p291_p2)  ;;  %v800_v35 = vld [vmem:[%s1783_s5] sm:$0xff] (!%p291_p2) }
   0xb   : > { %1422 = vmatpush3.bf16.msra.mxu0 (!%p291_p2), %v1419_v4  ;;  %v361_v16 = vld [vmem:[%s1779_s1 + $0x38] sm:$0xff] (!%p291_p2)  ;;  %v1439_v18 = vpack.c.bf16 (!%p291_p2), %v582_v13, %v581_v12  ;;  %v801_v36 = vld [vmem:[%s1783_s5 + $0x8] sm:$0xff] (!%p291_p2)  ;;  %v1619_v38 = vld [vmem:[%s1780_s2] ss:$0 sm:$0xff] (!%p291_p2) }
   0xc   : > { %1424 = vmatprep.subr.bf16.mxu0 (!%p291_p2), %v1423_v6  ;;  %1451 = vmatprep.subr.bf16.mxu1 (!%p291_p2), %v1435_v11  ;;  %v1431_v19 = vpack.c.bf16 (!%p291_p2), %v361_v16, %v360_v15  ;;  %v1443_v37 = vpack.c.bf16 (!%p291_p2), %v801_v36, %v800_v35  ;;  %v802_v61 = vld [vmem:[%s1783_s5 + $0x10] sm:$0xff] (!%p291_p2)  ;;  %v803_v62 = vld [vmem:[%s1783_s5 + $0x18] sm:$0xff] (!%p291_p2) }
   0xd   : > { %1453 = vmatpush3.bf16.msra.mxu1 (!%p291_p2), %v1435_v11  ;;  %v1447_v4 = vpack.c.bf16 (!%p291_p2), %v803_v62, %v802_v61 }
   0xe   : > { %1452 = vmatprep.subr.bf16.mxu1 (!%p291_p2), %v1439_v18 }
   0xf   : > { %s1789_s18 = smov (!%p327_p3, %s1192_s18), 31  ;;  %1426 = vmatpush3.bf16.msra.mxu0 %v1423_v6 }
  0x10   : > { %s1193_s13 = sshll.u32 %s1789_s18, 3  ;;  %1428 = vmatprep.subr.bf16.mxu0 %v1427_v14 }
  0x11   : > { %s1576_s20 = scalar_lea.vmem %s1778_s0, %s1193_s13  ;;  %1454 = vmatpush3.bf16.msra.mxu1 %v1439_v18 }
  0x12   : > { %v338_v17 = vld [vmem:[%s1576_s20] sm:$0xff]  ;;  %v339_v20 = vld [vmem:[%s1576_s20 + $0x8] sm:$0xff]  ;;  %v340_v21 = vld [vmem:[%s1576_s20 + $0x10] sm:$0xff]  ;;  %1444 = vmatprep.subr.bf16.mxu1 %v1443_v37 }
  0x13   : > { %1331 = vmatprep.mubr.msk.f32.mxu0 %vm369_vm0, %v338_v17  ;;  %1430 = vmatpush3.bf16.msra.mxu0 %v1427_v14  ;;  %v341_v22 = vld [vmem:[%s1576_s20 + $0x18] sm:$0xff]  ;;  %v342_v23 = vld [vmem:[%s1576_s20 + $0x20] sm:$0xff]  ;;  %v343_v24 = vld [vmem:[%s1576_s20 + $0x28] sm:$0xff] }
  0x14   : > { %1432 = vmatprep.subr.bf16.mxu0 %v1431_v19  ;;  %v344_v25 = vld [vmem:[%s1576_s20 + $0x30] sm:$0xff]  ;;  %v345_v26 = vld [vmem:[%s1576_s20 + $0x38] sm:$0xff]  ;;  %v346_v27 = vld [vmem:[%s1576_s20 + $0x40] sm:$0xff] }
  0x15   : > { %v347_v28 = vld [vmem:[%s1576_s20 + $0x48] sm:$0xff]  ;;  %v348_v29 = vld [vmem:[%s1576_s20 + $0x50] sm:$0xff]  ;;  %v349_v30 = vld [vmem:[%s1576_s20 + $0x58] sm:$0xff] }
  0x16   : > { %v350_v31 = vld [vmem:[%s1576_s20 + $0x60] sm:$0xff]  ;;  %v351_v32 = vld [vmem:[%s1576_s20 + $0x68] sm:$0xff]  ;;  %v352_v33 = vld [vmem:[%s1576_s20 + $0x70] sm:$0xff] }
  0x17   : > { %1434 = vmatpush3.bf16.msra.mxu0 %v1431_v19  ;;  %v353_v34 = vld [vmem:[%s1576_s20 + $0x78] sm:$0xff]  ;;  %s1741_s20 = scalar_lea.vmem %s1787_s9, %s1193_s13 }
  0x18   : > { %1436 = vmatprep.subr.bf16.mxu0 %v1435_v11 }
  0x1a   : > { %1332 = vmatmul.mubr.msk.f32.vlgmr.msra.gmra.mrb[0].mxu0 %vm369_vm0, %v339_v20 }
  0x1b   : > { %1334 = vmatprep.mubr.msk.f32.mxu0 %vm369_vm0, %v340_v21  ;;  %1438 = vmatpush3.bf16.msra.mxu0 %v1435_v11 }
  0x1c   : > { %1440 = vmatprep.subr.bf16.mxu0 %v1439_v18 }
  0x1e   : > { %1335 = vmatmul.mubr.msk.f32.gmra.mrb[2].mxu0 %vm369_vm0, %v341_v22 }
  0x1f   : > { %1337 = vmatprep.mubr.msk.f32.mxu0 %vm369_vm0, %v342_v23  ;;  %1442 = vmatpush3.bf16.msra.mxu0 %v1439_v18 }
  0x22   : > { %1338 = vmatmul.mubr.msk.f32.gmra.mrb[4].mxu0 %vm369_vm0, %v343_v24 }
  0x23   : > { %1340 = vmatprep.mubr.msk.f32.mxu0 %vm369_vm0, %v344_v25 }
  0x26   : > { %1341 = vmatmul.mubr.msk.f32.gmra.mrb[6].mxu0 %vm369_vm0, %v345_v26  ;;  %v1213_v26 = vld [vmem:[%s1782_s4] ss:$0 sm:$0xff] }
  0x27   : > { %1343 = vmatprep.mubr.msk.f32.mxu0 %vm369_vm0, %v346_v27 }
  0x2a   : > { %1344 = vmatmul.mubr.msk.f32.gmra.mrb[8].mxu0 %vm369_vm0, %v347_v28 }
  0x2b   : > { %1346 = vmatprep.mubr.msk.f32.mxu0 %vm369_vm0, %v348_v29 }
  0x2e   : > { %1347 = vmatmul.mubr.msk.f32.gmra.mrb[10].mxu0 %vm369_vm0, %v349_v30 }
  0x2f   : > { %1349 = vmatprep.mubr.msk.f32.mxu0 %vm369_vm0, %v350_v31 }
  0x32   : > { %1350 = vmatmul.mubr.msk.f32.gmra.mrb[12].mxu0 %vm369_vm0, %v351_v32 }
  0x33   : > { %1352 = vmatprep.mubr.msk.f32.mxu0 %vm369_vm0, %v352_v33 }
  0x36   : > { %1353 = vmatmul.mubr.msk.f32.gmra.mrb[14].mxu0 %vm369_vm0, %v353_v34 }
  0xed   : > { %v1333_v39 = vpop.f32.mrb[0].mxu0 }
  0xee   : > { %v490_v40 = vadd.f32 %v1333_v39, %v1619_v38  ;;  %v484_v41 = vpop.f32.mrb[1].mxu0 }
  0xef   : > { %v485_v42 = vadd.f32 %v1619_v38, %v484_v41 }
  0xf0   : > { %v564_v45 = vmax.f32 %v490_v40, 0.0 }
  0xf1   : > { %v563_v43 = vmax.f32 %v485_v42, 0.0  ;;  %v1336_v44 = vpop.f32.mrb[2].mxu0 }
  0xf2   : > { %v500_v46 = vadd.f32 %v1336_v44, %v1619_v38  ;;  %v494_v47 = vpop.f32.mrb[3].mxu0 }
  0xf3   : > { %v495_v48 = vadd.f32 %v1619_v38, %v494_v47  ;;  %1363 = vmatprep.mubr.msk.f32.mxu0 %vm590_vm1, %v563_v43 }
  0xf4   : > { %1364 = vmatmul.mubr.msk.f32.vlgmr.msra.gmra.mrb[16].mxu0 %vm590_vm1, %v564_v45  ;;  %v566_v51 = vmax.f32 %v500_v46, 0.0 }
  0xf5   : > { %v565_v49 = vmax.f32 %v495_v48, 0.0  ;;  %v1339_v50 = vpop.f32.mrb[4].mxu0 }
  0xf6   : > { %v510_v52 = vadd.f32 %v1339_v50, %v1619_v38  ;;  %v504_v53 = vpop.f32.mrb[5].mxu0 }
  0xf7   : > { %v505_v54 = vadd.f32 %v1619_v38, %v504_v53  ;;  %1366 = vmatprep.mubr.msk.f32.mxu0 %vm590_vm1, %v565_v49 }
  0xf8   : > { %v568_v55 = vmax.f32 %v510_v52, 0.0  ;;  %1367 = vmatmul.mubr.msk.f32.gmra.mrb[18].mxu0 %vm590_vm1, %v566_v51 }
  0xf9   : > { %v567_v56 = vmax.f32 %v505_v54, 0.0  ;;  %v1342_v57 = vpop.f32.mrb[6].mxu0 }
  0xfa   : > { %v520_v58 = vadd.f32 %v1342_v57, %v1619_v38  ;;  %v514_v59 = vpop.f32.mrb[7].mxu0 }
  0xfb   : > { %v515_v60 = vadd.f32 %v1619_v38, %v514_v59  ;;  %1369 = vmatprep.mubr.msk.f32.mxu0 %vm590_vm1, %v567_v56 }
  0xfc   : > { %v570_v63 = vmax.f32 %v520_v58, 0.0  ;;  %1370 = vmatmul.mubr.msk.f32.gmra.mrb[20].mxu0 %vm590_vm1, %v568_v55 }
  0xfd   : > { %v569_v0 = vmax.f32 %v515_v60, 0.0  ;;  %v1345_v1 = vpop.f32.mrb[8].mxu0 }
  0xfe   : > { %v530_v2 = vadd.f32 %v1345_v1, %v1619_v38  ;;  %v524_v3 = vpop.f32.mrb[9].mxu0 }
  0xff   : > { %v525_v5 = vadd.f32 %v1619_v38, %v524_v3  ;;  %1372 = vmatprep.mubr.msk.f32.mxu1 %vm590_vm1, %v569_v0 }
 0x100   : > { %v572_v6 = vmax.f32 %v530_v2, 0.0  ;;  %1373 = vmatmul.mubr.msk.f32.vlgmr.msra.gmra.mrb[0].mxu1 %vm590_vm1, %v570_v63 }
 0x101   : > { %v571_v7 = vmax.f32 %v525_v5, 0.0  ;;  %v1348_v8 = vpop.f32.mrb[10].mxu0  ;;  %1446 = vmatpush3.bf16.msra.mxu1 %v1443_v37 }
 0x102   : > { %v540_v9 = vadd.f32 %v1348_v8, %v1619_v38  ;;  %v534_v10 = vpop.f32.mrb[11].mxu0  ;;  %1448 = vmatprep.subr.bf16.mxu1 %v1447_v4 }
 0x103   : > { %v535_v11 = vadd.f32 %v1619_v38, %v534_v10  ;;  %1375 = vmatprep.mubr.msk.f32.mxu1 %vm590_vm1, %v571_v7 }
 0x104   : > { %v574_v12 = vmax.f32 %v540_v9, 0.0  ;;  %1376 = vmatmul.mubr.msk.f32.gmra.mrb[2].mxu1 %vm590_vm1, %v572_v6 }
 0x105   : > { %v573_v13 = vmax.f32 %v535_v11, 0.0  ;;  %v1351_v14 = vpop.f32.mrb[12].mxu0  ;;  %1450 = vmatpush3.bf16.msra.mxu1 %v1447_v4  ;;  %v1681_v11 = vld [vmem:[%s1784_s6] ss:$0 sm:$0xff] }
 0x106   : > { %v550_v15 = vadd.f32 %v1351_v14, %v1619_v38  ;;  %v544_v16 = vpop.f32.mrb[13].mxu0 }
 0x107   : > { %v545_v17 = vadd.f32 %v1619_v38, %v544_v16  ;;  %1378 = vmatprep.mubr.msk.f32.mxu1 %vm590_vm1, %v573_v13  ;;  %v1688_v16 = vld [vmem:[%s1785_s7] ss:$0 sm:$0xff] }
 0x108   : > { %v576_v18 = vmax.f32 %v550_v15, 0.0  ;;  %1379 = vmatmul.mubr.msk.f32.gmra.mrb[4].mxu1 %vm590_vm1, %v574_v12 }
 0x109   : > { %v575_v19 = vmax.f32 %v545_v17, 0.0  ;;  %v1354_v20 = vpop.f32.mrb[14].mxu0 }
 0x10a   : > { %v560_v21 = vadd.f32 %v1354_v20, %v1619_v38  ;;  %v554_v22 = vpop.f32.mrb[15].mxu0 }
 0x10b   : > { %v555_v23 = vadd.f32 %v1619_v38, %v554_v22  ;;  %1381 = vmatprep.mubr.msk.f32.mxu1 %vm590_vm1, %v575_v19 }
 0x10c   : > { %v578_v24 = vmax.f32 %v560_v21, 0.0  ;;  %1382 = vmatmul.mubr.msk.f32.gmra.mrb[6].mxu1 %vm590_vm1, %v576_v18 }
 0x10d   : > { %v577_v25 = vmax.f32 %v555_v23, 0.0 }
 0x10f   : > { %1384 = vmatprep.mubr.msk.f32.mxu1 %vm590_vm1, %v577_v25 }
 0x110   : > { %1385 = vmatmul.mubr.msk.f32.gmra.mrb[8].mxu1 %vm590_vm1, %v578_v24 }
 0x1c7   : > { %v1365_v27 = vpop.f32.mrb[16].mxu0 }
 0x1c8   : > { %v711_v28 = vadd.f32 %v1365_v27, %v1213_v26  ;;  %v705_v29 = vpop.f32.mrb[17].mxu0 }
 0x1c9   : > { %v706_v30 = vadd.f32 %v1213_v26, %v705_v29 }
 0x1ca   : > { %v785_v33 = vmax.f32 %v711_v28, 0.0 }
 0x1cb   : > { %v784_v31 = vmax.f32 %v706_v30, 0.0  ;;  %v1368_v32 = vpop.f32.mrb[18].mxu0 }
 0x1cc   : > { %v721_v34 = vadd.f32 %v1368_v32, %v1213_v26  ;;  %v715_v35 = vpop.f32.mrb[19].mxu0 }
 0x1cd   : > { %v716_v36 = vadd.f32 %v1213_v26, %v715_v35  ;;  %1395 = vmatprep.mubr.msk.f32.mxu1 %vm590_vm1, %v784_v31 }
 0x1ce   : > { %1396 = vmatmul.mubr.msk.f32.vlgmr.msra.gmra.mrb[10].mxu1 %vm590_vm1, %v785_v33  ;;  %v787_v39 = vmax.f32 %v721_v34, 0.0 }
 0x1cf   : > { %v786_v37 = vmax.f32 %v716_v36, 0.0  ;;  %v1371_v38 = vpop.f32.mrb[20].mxu0 }
 0x1d0   : > { %v731_v40 = vadd.f32 %v1371_v38, %v1213_v26  ;;  %v725_v41 = vpop.f32.mrb[21].mxu0 }
 0x1d1   : > { %v726_v42 = vadd.f32 %v1213_v26, %v725_v41  ;;  %1398 = vmatprep.mubr.msk.f32.mxu1 %vm590_vm1, %v786_v37 }
 0x1d2   : > { %v789_v43 = vmax.f32 %v731_v40, 0.0  ;;  %1399 = vmatmul.mubr.msk.f32.gmra.mrb[12].mxu1 %vm590_vm1, %v787_v39 }
 0x1d3   : > { %v788_v44 = vmax.f32 %v726_v42, 0.0  ;;  %v1374_v45 = vpop.f32.mrb[0].mxu1 }
 0x1d4   : > { %v741_v46 = vadd.f32 %v1374_v45, %v1213_v26  ;;  %v735_v47 = vpop.f32.mrb[1].mxu1 }
 0x1d5   : > { %v736_v48 = vadd.f32 %v1213_v26, %v735_v47  ;;  %1401 = vmatprep.mubr.msk.f32.mxu1 %vm590_vm1, %v788_v44 }
 0x1d6   : > { %v791_v49 = vmax.f32 %v741_v46, 0.0  ;;  %1402 = vmatmul.mubr.msk.f32.gmra.mrb[14].mxu1 %vm590_vm1, %v789_v43 }
 0x1d7   : > { %v790_v50 = vmax.f32 %v736_v48, 0.0  ;;  %v1377_v51 = vpop.f32.mrb[2].mxu1 }
 0x1d8   : > { %v751_v52 = vadd.f32 %v1377_v51, %v1213_v26  ;;  %v745_v53 = vpop.f32.mrb[3].mxu1 }
 0x1d9   : > { %v746_v54 = vadd.f32 %v1213_v26, %v745_v53  ;;  %1404 = vmatprep.mubr.msk.f32.mxu1 %vm590_vm1, %v790_v50 }
 0x1da   : > { %v793_v55 = vmax.f32 %v751_v52, 0.0  ;;  %1405 = vmatmul.mubr.msk.f32.gmra.mrb[16].mxu1 %vm590_vm1, %v791_v49 }
 0x1db   : > { %v792_v56 = vmax.f32 %v746_v54, 0.0  ;;  %v1380_v57 = vpop.f32.mrb[4].mxu1 }
 0x1dc   : > { %v761_v58 = vadd.f32 %v1380_v57, %v1213_v26  ;;  %v755_v59 = vpop.f32.mrb[5].mxu1 }
 0x1dd   : > { %v756_v60 = vadd.f32 %v1213_v26, %v755_v59  ;;  %1407 = vmatprep.mubr.msk.f32.mxu1 %vm590_vm1, %v792_v56 }
 0x1de   : > { %v795_v61 = vmax.f32 %v761_v58, 0.0  ;;  %1408 = vmatmul.mubr.msk.f32.gmra.mrb[18].mxu1 %vm590_vm1, %v793_v55 }
 0x1df   : > { %v794_v62 = vmax.f32 %v756_v60, 0.0  ;;  %v1383_v63 = vpop.f32.mrb[6].mxu1 }
 0x1e0   : > { %v771_v0 = vadd.f32 %v1383_v63, %v1213_v26  ;;  %v765_v1 = vpop.f32.mrb[7].mxu1 }
 0x1e1   : > { %v766_v2 = vadd.f32 %v1213_v26, %v765_v1  ;;  %1410 = vmatprep.mubr.msk.f32.mxu1 %vm590_vm1, %v794_v62 }
 0x1e2   : > { %v797_v3 = vmax.f32 %v771_v0, 0.0  ;;  %1411 = vmatmul.mubr.msk.f32.gmra.mrb[20].mxu1 %vm590_vm1, %v795_v61 }
 0x1e3   : > { %v796_v4 = vmax.f32 %v766_v2, 0.0  ;;  %v1386_v5 = vpop.f32.mrb[8].mxu1 }
 0x1e4   : > { %v781_v6 = vadd.f32 %v1386_v5, %v1213_v26  ;;  %v775_v7 = vpop.f32.mrb[9].mxu1 }
 0x1e5   : > { %v776_v8 = vadd.f32 %v1213_v26, %v775_v7  ;;  %1413 = vmatprep.mubr.msk.f32.mxu1 %vm590_vm1, %v796_v4 }
 0x1e6   : > { %v799_v9 = vmax.f32 %v781_v6, 0.0  ;;  %1414 = vmatmul.mubr.msk.f32.gmra.mrb[22].mxu1 %vm590_vm1, %v797_v3 }
 0x1e7   : > { %v798_v10 = vmax.f32 %v776_v8, 0.0 }
 0x1e9   : > { %1416 = vmatprep.mubr.msk.f32.mxu1 %vm590_vm1, %v798_v10 }
 0x1ea   : > { %1417 = vmatmul.mubr.msk.f32.gmra.mrb[24].mxu1 %vm590_vm1, %v799_v9 }
 0x2a1   : > { %v1397_v12 = vpop.f32.mrb[10].mxu1 }
 0x2a2   : > { %v931_v13 = vadd.f32 %v1397_v12, %v1681_v11  ;;  %v925_v14 = vpop.f32.mrb[11].mxu1 }
 0x2a3   : > { %v926_v15 = vadd.f32 %v1681_v11, %v925_v14 }
 0x2a4   : > { %v1005_v17 = vmax.f32 %v931_v13, 0.0 }
 0x2a5   : > { %v1004_v18 = vmax.f32 %v926_v15, 0.0  ;;  %v1400_v19 = vpop.f32.mrb[12].mxu1 }
 0x2a6   : > { %v941_v20 = vadd.f32 %v1400_v19, %v1681_v11  ;;  %v935_v21 = vpop.f32.mrb[13].mxu1  ;;  %v1029_v22 = vmul.f32 %v1688_v16, %v1005_v17 }
 0x2a7   : > { %v936_v23 = vadd.f32 %v1681_v11, %v935_v21  ;;  %v1028_v26 = vmul.f32 %v1688_v16, %v1004_v18 }
 0x2a8   : > { %v1007_v24 = vmax.f32 %v941_v20, 0.0  ;;  %v1047_v25 = vsel %vm590_vm1, %v1029_v22, 0.0 }
 0x2a9   : > { %v1006_v27 = vmax.f32 %v936_v23, 0.0  ;;  %1048 = vadd.xlane.f32.xlu0 %v1047_v25  ;;  %v1403_v28 = vpop.f32.mrb[14].mxu1  ;;  %v1044_v35 = vsel %vm590_vm1, %v1028_v26, 0.0 }
 0x2aa   : > { %v951_v29 = vadd.f32 %v1403_v28, %v1681_v11  ;;  %v945_v30 = vpop.f32.mrb[15].mxu1  ;;  %v1031_v31 = vmul.f32 %v1688_v16, %v1007_v24 }
 0x2ab   : > { %v946_v32 = vadd.f32 %v1681_v11, %v945_v30  ;;  %v1030_v36 = vmul.f32 %v1688_v16, %v1006_v27  ;;  %v1248_v30 = vld [vmem:[#allocation2] ss:$0 sm:$0xff] }
 0x2ac   : > { %v1009_v33 = vmax.f32 %v951_v29, 0.0  ;;  %v1053_v34 = vsel %vm590_vm1, %v1031_v31, 0.0 }
 0x2ad   : > { %v1008_v37 = vmax.f32 %v946_v32, 0.0  ;;  %1054 = vadd.xlane.f32.xlu1 %v1053_v34  ;;  %v1406_v38 = vpop.f32.mrb[16].mxu1  ;;  %1045 = vadd.xlane.f32.xlu0 %v1044_v35  ;;  %v1050_v44 = vsel %vm590_vm1, %v1030_v36, 0.0 }
 0x2ae   : > { %v961_v39 = vadd.f32 %v1406_v38, %v1681_v11  ;;  %v955_v40 = vpop.f32.mrb[17].mxu1  ;;  %v1033_v45 = vmul.f32 %v1688_v16, %v1009_v33 }
 0x2af   : > { %v956_v41 = vadd.f32 %v1681_v11, %v955_v40  ;;  %v1032_v42 = vmul.f32 %v1688_v16, %v1008_v37 }
 0x2b0   : > { %v1011_v43 = vmax.f32 %v961_v39, 0.0  ;;  %v1059_v54 = vsel %vm590_vm1, %v1033_v45, 0.0 }
 0x2b1   : > { %v1010_v46 = vmax.f32 %v956_v41, 0.0  ;;  %v1409_v47 = vpop.f32.mrb[18].mxu1  ;;  %1051 = vadd.xlane.f32.xlu1 %v1050_v44  ;;  %v1056_v48 = vsel %vm590_vm1, %v1032_v42, 0.0 }
 0x2b2   : > { %v971_v49 = vadd.f32 %v1409_v47, %v1681_v11  ;;  %v965_v50 = vpop.f32.mrb[19].mxu1  ;;  %1057 = vadd.xlane.f32.xlu0 %v1056_v48  ;;  %v1035_v55 = vmul.f32 %v1688_v16, %v1011_v43 }
 0x2b3   : > { %v966_v51 = vadd.f32 %v1681_v11, %v965_v50  ;;  %v1034_v52 = vmul.f32 %v1688_v16, %v1010_v46 }
 0x2b4   : > { %v1013_v53 = vmax.f32 %v971_v49, 0.0  ;;  %v1065_v0 = vsel %vm590_vm1, %v1035_v55, 0.0 }
 0x2b5   : > { %v1012_v56 = vmax.f32 %v966_v51, 0.0  ;;  %v1412_v57 = vpop.f32.mrb[20].mxu1  ;;  %1060 = vadd.xlane.f32.xlu1 %v1059_v54  ;;  %v1062_v58 = vsel %vm590_vm1, %v1034_v52, 0.0 }
 0x2b6   : > { %v981_v59 = vadd.f32 %v1412_v57, %v1681_v11  ;;  %v975_v60 = vpop.f32.mrb[21].mxu1  ;;  %1063 = vadd.xlane.f32.xlu0 %v1062_v58  ;;  %v1037_v1 = vmul.f32 %v1688_v16, %v1013_v53 }
 0x2b7   : > { %v976_v61 = vadd.f32 %v1681_v11, %v975_v60  ;;  %v1036_v62 = vmul.f32 %v1688_v16, %v1012_v56 }
 0x2b8   : > { %v1015_v63 = vmax.f32 %v981_v59, 0.0  ;;  %v1071_v10 = vsel %vm590_vm1, %v1037_v1, 0.0 }
 0x2b9   : > { %v1014_v2 = vmax.f32 %v976_v61, 0.0  ;;  %v1415_v3 = vpop.f32.mrb[22].mxu1  ;;  %1066 = vadd.xlane.f32.xlu1 %v1065_v0  ;;  %v1068_v4 = vsel %vm590_vm1, %v1036_v62, 0.0 }
 0x2ba   : > { %v991_v5 = vadd.f32 %v1415_v3, %v1681_v11  ;;  %v985_v6 = vpop.f32.mrb[23].mxu1  ;;  %1069 = vadd.xlane.f32.xlu0 %v1068_v4  ;;  %v1039_v12 = vmul.f32 %v1688_v16, %v1015_v63 }
 0x2bb   : > { %v986_v7 = vadd.f32 %v1681_v11, %v985_v6  ;;  %v1038_v8 = vmul.f32 %v1688_v16, %v1014_v2 }
 0x2bc   : > { %v1017_v9 = vmax.f32 %v991_v5, 0.0  ;;  %v1077_v22 = vsel %vm590_vm1, %v1039_v12, 0.0 }
 0x2bd   : > { %v1016_v13 = vmax.f32 %v986_v7, 0.0  ;;  %v1418_v14 = vpop.f32.mrb[24].mxu1  ;;  %1072 = vadd.xlane.f32.xlu1 %v1071_v10  ;;  %v1074_v15 = vsel %vm590_vm1, %v1038_v8, 0.0 }
 0x2be   : > { %v1001_v17 = vadd.f32 %v1418_v14, %v1681_v11  ;;  %v995_v18 = vpop.f32.mrb[25].mxu1  ;;  %1075 = vadd.xlane.f32.xlu0 %v1074_v15  ;;  %v1041_v23 = vmul.f32 %v1688_v16, %v1017_v9 }
 0x2bf   : > { %v996_v19 = vadd.f32 %v1681_v11, %v995_v18  ;;  %v1040_v20 = vmul.f32 %v1688_v16, %v1016_v13 }
 0x2c0   : > { %v1019_v21 = vmax.f32 %v1001_v17, 0.0  ;;  %v1083_v27 = vsel %vm590_vm1, %v1041_v23, 0.0 }
 0x2c1   : > { %v1018_v24 = vmax.f32 %v996_v19, 0.0  ;;  %1078 = vadd.xlane.f32.xlu1 %v1077_v22  ;;  %v1080_v25 = vsel %vm590_vm1, %v1040_v20, 0.0 }
 0x2c2   : > { %1081 = vadd.xlane.f32.xlu0 %v1080_v25  ;;  %v1043_v28 = vmul.f32 %v1688_v16, %v1019_v21 }
 0x2c3   : > { %v1042_v26 = vmul.f32 %v1688_v16, %v1018_v24 }
 0x2c4   : > { %v1089_v29 = vsel %vm590_vm1, %v1043_v28, 0.0 }
 0x2c5   : > { %1084 = vadd.xlane.f32.xlu1 %v1083_v27  ;;  %v1086_v11 = vsel %vm590_vm1, %v1042_v26, 0.0 }
 0x2c6   : > { %1087 = vadd.xlane.f32.xlu0 %v1086_v11 }
 0x2c9   : > { %1090 = vadd.xlane.f32.xlu1 %v1089_v29 }
 0x336   : > { %v1049_v16 = vpop.xlane.xlu0 %1048 }
 0x337   : > { %v1099_v31 = vadd.f32 %v1248_v30, %v1049_v16 }
 0x339   : > { %1116 = vst.msk [vmem:[%s1741_s20 + $0x8] sm:$0xff] %vm1114_vm2, %v1099_v31 }
 0x33a   : > { %v1055_v32 = vpop.xlane.xlu1 %1054  ;;  %v1046_v33 = vpop.xlane.xlu0 %1045 }
 0x33b   : > { %v1101_v34 = vadd.f32 %v1248_v30, %v1055_v32  ;;  %v1098_v35 = vadd.f32 %v1248_v30, %v1046_v33 }
 0x33d   : > { %1118 = vst.msk [vmem:[%s1741_s20 + $0x18] sm:$0xff] %vm1114_vm2, %v1101_v34  ;;  %1115 = vst.msk [vmem:[%s1741_s20] sm:$0xff] %vm1114_vm2, %v1098_v35 }
 0x33e   : > { %v1052_v36 = vpop.xlane.xlu1 %1051 }
 0x33f   : > { %v1100_v37 = vadd.f32 %v1248_v30, %v1052_v36  ;;  %v1058_v38 = vpop.xlane.xlu0 %1057 }
 0x340   : > { %v1102_v39 = vadd.f32 %v1248_v30, %v1058_v38 }
 0x341   : > { %1117 = vst.msk [vmem:[%s1741_s20 + $0x10] sm:$0xff] %vm1114_vm2, %v1100_v37 }
 0x342   : > { %1119 = vst.msk [vmem:[%s1741_s20 + $0x20] sm:$0xff] %vm1114_vm2, %v1102_v39  ;;  %v1061_v40 = vpop.xlane.xlu1 %1060 }
 0x343   : > { %v1103_v41 = vadd.f32 %v1248_v30, %v1061_v40  ;;  %v1064_v42 = vpop.xlane.xlu0 %1063 }
 0x344   : > { %v1104_v43 = vadd.f32 %v1248_v30, %v1064_v42 }
 0x345   : > { %1120 = vst.msk [vmem:[%s1741_s20 + $0x28] sm:$0xff] %vm1114_vm2, %v1103_v41 }
 0x346   : > { %1121 = vst.msk [vmem:[%s1741_s20 + $0x30] sm:$0xff] %vm1114_vm2, %v1104_v43  ;;  %v1067_v44 = vpop.xlane.xlu1 %1066 }
 0x347   : > { %v1105_v45 = vadd.f32 %v1248_v30, %v1067_v44  ;;  %v1070_v46 = vpop.xlane.xlu0 %1069 }
 0x348   : > { %v1106_v47 = vadd.f32 %v1248_v30, %v1070_v46 }
 0x349   : > { %1122 = vst.msk [vmem:[%s1741_s20 + $0x38] sm:$0xff] %vm1114_vm2, %v1105_v45 }
 0x34a   : > { %1123 = vst.msk [vmem:[%s1741_s20 + $0x40] sm:$0xff] %vm1114_vm2, %v1106_v47  ;;  %v1073_v48 = vpop.xlane.xlu1 %1072 }
 0x34b   : > { %v1107_v49 = vadd.f32 %v1248_v30, %v1073_v48  ;;  %v1076_v50 = vpop.xlane.xlu0 %1075 }
 0x34c   : > { %v1108_v51 = vadd.f32 %v1248_v30, %v1076_v50 }
 0x34d   : > { %1124 = vst.msk [vmem:[%s1741_s20 + $0x48] sm:$0xff] %vm1114_vm2, %v1107_v49 }
 0x34e   : > { %1125 = vst.msk [vmem:[%s1741_s20 + $0x50] sm:$0xff] %vm1114_vm2, %v1108_v51  ;;  %v1079_v52 = vpop.xlane.xlu1 %1078 }
 0x34f   : > { %v1109_v53 = vadd.f32 %v1248_v30, %v1079_v52  ;;  %v1082_v54 = vpop.xlane.xlu0 %1081 }
 0x350   : > { %v1110_v55 = vadd.f32 %v1248_v30, %v1082_v54 }
 0x351   : > { %1126 = vst.msk [vmem:[%s1741_s20 + $0x58] sm:$0xff] %vm1114_vm2, %v1109_v53 }
 0x352   : > { %1127 = vst.msk [vmem:[%s1741_s20 + $0x60] sm:$0xff] %vm1114_vm2, %v1110_v55  ;;  %v1085_v56 = vpop.xlane.xlu1 %1084 }
 0x353   : > { %v1111_v57 = vadd.f32 %v1248_v30, %v1085_v56  ;;  %v1088_v58 = vpop.xlane.xlu0 %1087 }
 0x354   : > { %v1112_v59 = vadd.f32 %v1248_v30, %v1088_v58 }
 0x355   : > { %1128 = vst.msk [vmem:[%s1741_s20 + $0x68] sm:$0xff] %vm1114_vm2, %v1111_v57 }
 0x356   : > { %1129 = vst.msk [vmem:[%s1741_s20 + $0x70] sm:$0xff] %vm1114_vm2, %v1112_v59  ;;  %v1091_v60 = vpop.xlane.xlu1 %1090 }
 0x357   : > { %v1113_v61 = vadd.f32 %v1248_v30, %v1091_v60 }
 0x359   : > { %1130 = vst.msk [vmem:[%s1741_s20 + $0x78] sm:$0xff] %vm1114_vm2, %v1113_v61 }
 0x35a PF: > { %s21_s11 = sadd.s32 1, %s1469_s11  }
 0x35b   : > { %p18_p4 = scmp.ge.s32.totalorder %s21_s11, 4  }
 0x35d   :  { %20 = sbr.rel (!%p18_p4) target bundleno = 3 (0x3), region = 86 }

</bundles_post_ra>
